<compile_context>
chip_gen: v7x
topology: tpu7x:2x2x1
jax: 0.10.0
libtpu: 0.0.40
codegen_flags: <defaults>
</compile_context>

<pallas_src>
import functools

import jax
import jax.numpy as jnp
from jax.experimental import pallas as pl
from jax.experimental.pallas import tpu as pltpu


def _round_up(a: int, b: int) -> int:
    return (a + b - 1) // b * b


def _vmem_cap_bytes() -> int:
    try:
        info = pltpu.get_tpu_info()
        return int(getattr(info, "vmem_capacity_bytes", 64 << 20))
    except Exception:
        return 64 << 20


def _vmem_needed(tm: int, ti: int, H: int, out_isize: int) -> int:
    # Double-buffered per-block operands + in-kernel f32 temporaries.
    w_blk = H * (2 * ti) * 2 + (2 * ti) * 4 + ti * H * 2 + H * 4   # W13,b13,W2,b2
    io_blk = tm * H * 2 + tm * H * out_isize                        # x tile + out tile
    tmps = 2 * tm * (2 * ti) * 4 + tm * H * 4                       # h13/gate f32 + acc
    return 2 * (w_blk + io_blk) + tmps


def plan_ffn_tiles(M, H, I, out_dtype, *, tm=512, ti=None, vmem_cap=None):
    """Pick (tm, ti, vmem_limit_bytes) for the given problem size."""
    if vmem_cap is None:
        vmem_cap = _vmem_cap_bytes()
    budget = int(0.8 * vmem_cap)
    out_isize = jnp.dtype(out_dtype).itemsize

    # Row tile: multiple of 16 (bf16 sublane packing), capped by padded M,
    # and split into >=2 tiles when M allows so both v7x TCs get work.
    tm = max(16, min(_round_up(tm, 16), _round_up(M, 16)))
    if M >= 32 and _round_up(M, tm) // tm < 2:
        tm = max(16, _round_up((M + 1) // 2, 16))

    # Intermediate block candidates: whole I first (weights DMA'd once per call),
    # then halved lane-aligned divisors.
    cands = [I]
    t = I // 2
    while t >= 128:
        if I % t == 0 and t % 128 == 0:
            cands.append(t)
        t //= 2
    if ti is not None:
        capped = [c for c in cands if c <= ti]
        cands = capped if capped else [cands[-1]]

    ti_sel = cands[-1]
    for c in cands:
        if _vmem_needed(tm, c, H, out_isize) <= budget:
            ti_sel = c
            break

    # Still over budget -> shrink the row tile.
    while _vmem_needed(tm, ti_sel, H, out_isize) > budget and tm > 64:
        tm = max(16, _round_up(tm // 2, 16))

    vmem_limit = int(min(vmem_cap,
                         max(_vmem_needed(tm, ti_sel, H, out_isize) + (8 << 20),
                             32 << 20)))
    return tm, ti_sel, vmem_limit


def pack_ffn_params(w1, b1, w3, b3, w2, b2, *, ti):
    """Pack FFN weights ONCE, outside the per-call path.

    w1, w3: (H, I); b1, b3: I elements; w2: (I, H); b2: H elements.
    Returns:
      w13p: (nI, H, 2*ti) bf16   block k = [W1[:, k*ti:(k+1)*ti] | W3[:, ...]]
      b13p: (nI, 1, 2*ti) f32
      w2p : (nI, ti, H)   bf16   block k = W2[k*ti:(k+1)*ti, :]
      b2p : (1, H)        f32
    """
    H, I = w1.shape
    assert I % ti == 0, "intermediate_size must be divisible by the I-block size"
    nI = I // ti
    w13p = jnp.concatenate(
        [w1.reshape(H, nI, ti), w3.reshape(H, nI, ti)], axis=-1
    ).transpose(1, 0, 2).astype(jnp.bfloat16)                       # (nI, H, 2ti)
    b13p = jnp.concatenate(
        [jnp.reshape(b1, (nI, 1, ti)), jnp.reshape(b3, (nI, 1, ti))], axis=-1
    ).astype(jnp.float32)                                           # (nI, 1, 2ti)
    w2p = w2.reshape(nI, ti, H).astype(jnp.bfloat16)                # (nI, ti, H)
    b2p = jnp.reshape(b2, (1, H)).astype(jnp.float32)               # (1, H)
    return w13p, b13p, w2p, b2p


# ----------------------------------------------------------------------------- kernels

def _ffn_partial(x_ref, w13_ref, b13_ref, w2_ref, *, ti):
    """Partial (tm, H) contribution of one I-block, f32."""
    x = x_ref[...]
    # Fused gate/up projection: one MXU pass over the (H, 2*ti) block.
    h13 = jnp.dot(x, w13_ref[...], preferred_element_type=jnp.float32) + b13_ref[...]
    h1 = h13[:, :ti]                     # W1 path (lane-aligned slice)
    h3 = h13[:, ti:]                     # W3 path
    g = (h1 * jax.nn.sigmoid(h1) * h3).astype(w2_ref.dtype)   # SiLU * up, back to bf16
    # TODO(synk): dropout omitted (inference-mode identity; no RNG mask applied).
    return jnp.dot(g, w2_ref[...], preferred_element_type=jnp.float32)


def ffn_kernel_f32out(x_ref, w13_ref, b13_ref, w2_ref, b2_ref, o_ref, *, ti):
    """f32 output: accumulate directly into the resident output tile (no scratch)."""
    k = pl.program_id(1)
    part = _ffn_partial(x_ref, w13_ref, b13_ref, w2_ref, ti=ti)

    @pl.when(k == 0)
    def _():
        o_ref[...] = part

    @pl.when(k != 0)
    def _():
        o_ref[...] = o_ref[...] + part

    @pl.when(k == pl.num_programs(1) - 1)
    def _():
        o_ref[...] = o_ref[...] + b2_ref[...]


def ffn_kernel_scratch(x_ref, w13_ref, b13_ref, w2_ref, b2_ref, o_ref, acc_ref, *, ti):
    """Non-f32 output: f32 VMEM scratch accumulator, cast once at the end."""
    k = pl.program_id(1)
    part = _ffn_partial(x_ref, w13_ref, b13_ref, w2_ref, ti=ti)

    @pl.when(k == 0)
    def _():
        acc_ref[...] = part

    @pl.when(k != 0)
    def _():
        acc_ref[...] = acc_ref[...] + part

    @pl.when(k == pl.num_programs(1) - 1)
    def _():
        o_ref[...] = (acc_ref[...] + b2_ref[...]).astype(o_ref.dtype)


# ----------------------------------------------------------------------------- wrappers

def ffn_pallas_packed(x, w13p, b13p, w2p, b2p, *, tm, vmem_limit_bytes=None,
                      out_dtype=None):
    """x: (B, S, H); weights pre-packed by pack_ffn_params."""
    B, S, H = x.shape
    nI, _, two_ti = w13p.shape
    ti = two_ti // 2
    I = nI * ti
    M = B * S
    out_dtype = out_dtype or x.dtype
    out_isize = jnp.dtype(out_dtype).itemsize

    M_pad = _round_up(M, tm)
    x2d = x.reshape(M, H)
    if M_pad != M:
        x2d = jnp.pad(x2d, ((0, M_pad - M), (0, 0)))
    x2d = x2d.astype(jnp.bfloat16)

    if vmem_limit_bytes is None:
        vmem_limit_bytes = int(min(_vmem_cap_bytes(),
                                   max(_vmem_needed(tm, ti, H, out_isize) + (8 << 20),
                                       32 << 20)))

    num_row_tiles = M_pad // tm
    weight_bytes = (w13p.size + w2p.size) * 2 + (b13p.size + b2p.size) * 4
    weight_passes = 1 if nI == 1 else num_row_tiles      # grid-invariant when nI == 1
    cost = pl.CostEstimate(
        flops=6 * M_pad * H * I,
        transcendentals=M_pad * I,
        bytes_accessed=M_pad * H * 2 + M_pad * H * out_isize + weight_passes * weight_bytes,
    )

    f32_out = jnp.dtype(out_dtype) == jnp.dtype(jnp.float32)
    kernel = functools.partial(
        ffn_kernel_f32out if f32_out else ffn_kernel_scratch, ti=ti)
    scratch_shapes = [] if f32_out else [pltpu.VMEM((tm, H), jnp.float32)]

    out2d = pl.pallas_call(
        kernel,
        out_shape=jax.ShapeDtypeStruct((M_pad, H), out_dtype),
        grid_spec=pltpu.PrefetchScalarGridSpec(
            num_scalar_prefetch=0,
            grid=(num_row_tiles, nI),                              # reduction axis last
            in_specs=[
                pl.BlockSpec((tm, H), lambda i, k: (i, 0)),        # x rows
                pl.BlockSpec((None, H, 2 * ti), lambda i, k: (k, 0, 0)),   # [W1|W3] blk k
                pl.BlockSpec((None, 1, 2 * ti), lambda i, k: (k, 0, 0)),   # [b1|b3] blk k
                pl.BlockSpec((None, ti, H), lambda i, k: (k, 0, 0)),       # W2 blk k
                pl.BlockSpec((1, H), lambda i, k: (0, 0)),                 # b2
            ],
            out_specs=pl.BlockSpec((tm, H), lambda i, k: (i, 0)),
            scratch_shapes=scratch_shapes,
        ),
        compiler_params=pltpu.CompilerParams(
            dimension_semantics=("parallel", "arbitrary"),
            vmem_limit_bytes=vmem_limit_bytes,
        ),
        cost_estimate=cost,
    )(x2d, w13p, b13p, w2p, b2p)

    return out2d[:M].reshape(B, S, H)


def ffn_pallas(x, w1, b1, w3, b3, w2, b2, *, tm=512, ti=None):
    """Convenience wrapper (packs per call). For repeated calls, call
    pack_ffn_params once and use ffn_pallas_packed directly."""
    B, S, H = x.shape
    I = w1.shape[1]
    tm_sel, ti_sel, vmem_limit = plan_ffn_tiles(B * S, H, I, x.dtype, tm=tm, ti=ti)
    packed = pack_ffn_params(w1, b1, w3, b3, w2, b2, ti=ti_sel)
    return ffn_pallas_packed(x, *packed, tm=tm_sel, vmem_limit_bytes=vmem_limit)


# ----------------------------------------------------------------------------- reference

def ffn_reference(x2d, w1, b1, w3, b3, w2, b2):
    """Pure-JAX reference with matching bf16-operand / f32-accumulate matmuls."""
    xb = x2d.astype(jnp.bfloat16)
    h1 = jnp.dot(xb, w1.astype(jnp.bfloat16),
                 preferred_element_type=jnp.float32) + b1
    gate = h1 * jax.nn.sigmoid(h1)
    h3 = jnp.dot(xb, w3.astype(jnp.bfloat16),
                 preferred_element_type=jnp.float32) + b3
    g = (gate * h3).astype(jnp.bfloat16)
    return jnp.dot(g, w2.astype(jnp.bfloat16),
                   preferred_element_type=jnp.float32) + b2


def _make_params(key, H, I):
    k1, k2, k3, kb1, kb2, kb3 = jax.random.split(key, 6)

    def linear_params(kw, kb, fan_in, fan_out):
        bound = 1.0 / (fan_in ** 0.5)
        w = jax.random.uniform(kw, (fan_in, fan_out), jnp.float32, -bound, bound)
        b = jax.random.uniform(kb, (1, fan_out), jnp.float32, -bound, bound)
        return w, b

    w1, b1 = linear_params(k1, kb1, H, I)   # nn.Linear(hidden, intermediate)
    w3, b3 = linear_params(k3, kb3, H, I)   # nn.Linear(hidden, intermediate)
    w2, b2 = linear_params(k2, kb2, I, H)   # nn.Linear(intermediate, hidden)
    return w1, b1, w3, b3, w2, b2


if __name__ == "__main__":
    key = jax.random.PRNGKey(0)

    # --- config 1: toy shapes, f32 input, nI=1 (weights resident, direct-out path)
    B, S, H, I = 2, 8, 128, 256
    kx, kp = jax.random.split(key)
    x = jax.random.normal(kx, (B, S, H), dtype=jnp.float32)
    params = _make_params(kp, H, I)

    tm1, ti1, vl1 = plan_ffn_tiles(B * S, H, I, x.dtype)
    packed1 = pack_ffn_params(*params, ti=ti1)          # pack once, outside the call
    out = ffn_pallas_packed(x, *packed1, tm=tm1, vmem_limit_bytes=vl1)
    out = jax.block_until_ready(out)
    ref = ffn_reference(x.reshape(-1, H), *params).reshape(B, S, H)
    assert out.shape == (B, S, H)
    assert jnp.allclose(out, ref, atol=1e-2, rtol=1e-2), "config-1 mismatch"

    # --- config 2: bf16 input, multi row-tile grid + blocked I reduction (scratch path)
    B2, S2, H2, I2 = 2, 64, 128, 512
    kx2, kp2 = jax.random.split(kp)
    x2 = jax.random.normal(kx2, (B2, S2, H2), dtype=jnp.float32).astype(jnp.bfloat16)
    p2 = _make_params(kp2, H2, I2)

    tm2, ti2, vl2 = plan_ffn_tiles(B2 * S2, H2, I2, x2.dtype, tm=64, ti=256)
    packed2 = pack_ffn_params(*p2, ti=ti2)               # forces nI = 2, 2 row tiles
    out2 = ffn_pallas_packed(x2, *packed2, tm=tm2, vmem_limit_bytes=vl2)
    out2 = jax.block_until_ready(out2)
    ref2 = ffn_reference(
        x2.reshape(-1, H2).astype(jnp.float32), *p2).reshape(B2, S2, H2)
    assert out2.shape == (B2, S2, H2)
    assert jnp.allclose(out2.astype(jnp.float32), ref2, atol=2e-2, rtol=2e-2), \
        "config-2 mismatch"

    print("KERNEL_OK")
</pallas_src>

<mosaic_0001>
module attributes {stable_mosaic.version = 11 : i64} {
  func.func @ffn_kernel_f32out(%arg0: i32, %arg1: i32, %arg2: memref<16x128xbf16, #tpu.memory_space<vmem>>, %arg3: memref<1x128x512xbf16, #tpu.memory_space<vmem>>, %arg4: memref<1x1x512xf32, #tpu.memory_space<vmem>>, %arg5: memref<1x256x128xbf16, #tpu.memory_space<vmem>>, %arg6: memref<1x128xf32, #tpu.memory_space<vmem>>, %arg7: memref<16x128xf32, #tpu.memory_space<vmem>>) attributes {dimension_semantics = [#tpu.dimension_semantics<parallel>, #tpu.dimension_semantics<arbitrary>], iteration_bounds = array<i64: 1, 1>, scalar_prefetch = 0 : i64, scratch_operands = 0 : i64, tpu.core_type = #tpu.core_type<tc>, window_params = [{transform_indices = @transform_0, window_bounds = array<i64: 16, 128>}, {transform_indices = @transform_1, window_bounds = array<i64: 1, 128, 512>}, {transform_indices = @transform_2, window_bounds = array<i64: 1, 1, 512>}, {transform_indices = @transform_3, window_bounds = array<i64: 1, 256, 128>}, {pipeline_mode = #tpu.pipeline_mode<synchronous>, transform_indices = @transform_4, window_bounds = array<i64: 1, 128>}, {transform_indices = @transform_5, window_bounds = array<i64: 16, 128>}]} {
    %c0 = arith.constant 0 : index
    %c0_0 = arith.constant 0 : index
    %0 = vector.load %arg2[%c0, %c0_0] : memref<16x128xbf16, #tpu.memory_space<vmem>>, vector<16x128xbf16>
    %c0_1 = arith.constant 0 : index
    %c0_2 = arith.constant 0 : index
    %c0_3 = arith.constant 0 : index
    %1 = vector.load %arg3[%c0_1, %c0_2, %c0_3] : memref<1x128x512xbf16, #tpu.memory_space<vmem>>, vector<1x128x512xbf16>
    %2 = vector.shape_cast %1 : vector<1x128x512xbf16> to vector<128x512xbf16>
    %cst = arith.constant dense<0.000000e+00> : vector<16x512xf32>
    %3 = tpu.matmul %0, %2, %cst {dimension_numbers = #tpu.dot_dimension_numbers<[1], [0], [0], [1], [0, 0, 1, 1], [], []>} : vector<16x128xbf16>, vector<128x512xbf16>, vector<16x512xf32> -> vector<16x512xf32>
    %c0_4 = arith.constant 0 : index
    %c0_5 = arith.constant 0 : index
    %c0_6 = arith.constant 0 : index
    %4 = vector.load %arg4[%c0_4, %c0_5, %c0_6] : memref<1x1x512xf32, #tpu.memory_space<vmem>>, vector<1x1x512xf32>
    %5 = vector.shape_cast %4 : vector<1x1x512xf32> to vector<1x512xf32>
    %6 = vector.broadcast %5 : vector<1x512xf32> to vector<16x512xf32>
    %7 = arith.addf %3, %6 : vector<16x512xf32>
    %8 = vector.extract_strided_slice %7 {offsets = [0, 0], sizes = [16, 256], strides = [1, 1]} : vector<16x512xf32> to vector<16x256xf32>
    %9 = vector.extract_strided_slice %7 {offsets = [0, 256], sizes = [16, 256], strides = [1, 1]} : vector<16x512xf32> to vector<16x256xf32>
    %10 = arith.negf %8 : vector<16x256xf32>
    %11 = math.exp %10 : vector<16x256xf32>
    %cst_7 = arith.constant 1.000000e+00 : f32
    %12 = vector.broadcast %cst_7 : f32 to vector<16x256xf32>
    %13 = arith.addf %12, %11 : vector<16x256xf32>
    %14 = arith.divf %12, %13 : vector<16x256xf32>
    %15 = arith.mulf %8, %14 : vector<16x256xf32>
    %16 = arith.mulf %15, %9 : vector<16x256xf32>
    %17 = arith.truncf %16 : vector<16x256xf32> to vector<16x256xbf16>
    %c0_8 = arith.constant 0 : index
    %c0_9 = arith.constant 0 : index
    %c0_10 = arith.constant 0 : index
    %18 = vector.load %arg5[%c0_8, %c0_9, %c0_10] : memref<1x256x128xbf16, #tpu.memory_space<vmem>>, vector<1x256x128xbf16>
    %19 = vector.shape_cast %18 : vector<1x256x128xbf16> to vector<256x128xbf16>
    %cst_11 = arith.constant dense<0.000000e+00> : vector<16x128xf32>
    %20 = tpu.matmul %17, %19, %cst_11 {dimension_numbers = #tpu.dot_dimension_numbers<[1], [0], [0], [1], [0, 0, 1, 1], [], []>} : vector<16x256xbf16>, vector<256x128xbf16>, vector<16x128xf32> -> vector<16x128xf32>
    %c0_i32 = arith.constant 0 : i32
    %21 = arith.cmpi eq, %arg1, %c0_i32 : i32
    %22 = arith.extui %21 : i1 to i32
    %c0_i32_12 = arith.constant 0 : i32
    %23 = arith.cmpi ne, %22, %c0_i32_12 : i32
    scf.if %23 {
      %c0_17 = arith.constant 0 : index
      %c0_18 = arith.constant 0 : index
      %30 = vector.load %arg7[%c0_17, %c0_18] : memref<16x128xf32, #tpu.memory_space<vmem>>, vector<16x128xf32>
      tpu.vector_store %arg7[%c0_17, %c0_18], %20 {strides = array<i32>} : memref<16x128xf32, #tpu.memory_space<vmem>>, vector<16x128xf32>,
    } else {
    }
    %c0_i32_13 = arith.constant 0 : i32
    %24 = arith.cmpi ne, %arg1, %c0_i32_13 : i32
    %25 = arith.extui %24 : i1 to i32
    %c0_i32_14 = arith.constant 0 : i32
    %26 = arith.cmpi ne, %25, %c0_i32_14 : i32
    scf.if %26 {
      %c0_17 = arith.constant 0 : index
      %c0_18 = arith.constant 0 : index
      %30 = vector.load %arg7[%c0_17, %c0_18] : memref<16x128xf32, #tpu.memory_space<vmem>>, vector<16x128xf32>
      %31 = arith.addf %30, %20 : vector<16x128xf32>
      %c0_19 = arith.constant 0 : index
      %c0_20 = arith.constant 0 : index
      %32 = vector.load %arg7[%c0_19, %c0_20] : memref<16x128xf32, #tpu.memory_space<vmem>>, vector<16x128xf32>
      tpu.vector_store %arg7[%c0_19, %c0_20], %31 {strides = array<i32>} : memref<16x128xf32, #tpu.memory_space<vmem>>, vector<16x128xf32>,
    } else {
    }
    %c0_i32_15 = arith.constant 0 : i32
    %27 = arith.cmpi eq, %arg1, %c0_i32_15 : i32
    %28 = arith.extui %27 : i1 to i32
    %c0_i32_16 = arith.constant 0 : i32
    %29 = arith.cmpi ne, %28, %c0_i32_16 : i32
    scf.if %29 {
      %c0_17 = arith.constant 0 : index
      %c0_18 = arith.constant 0 : index
      %30 = vector.load %arg7[%c0_17, %c0_18] : memref<16x128xf32, #tpu.memory_space<vmem>>, vector<16x128xf32>
      %c0_19 = arith.constant 0 : index
      %c0_20 = arith.constant 0 : index
      %31 = vector.load %arg6[%c0_19, %c0_20] : memref<1x128xf32, #tpu.memory_space<vmem>>, vector<1x128xf32>
      %32 = vector.broadcast %31 : vector<1x128xf32> to vector<16x128xf32>
      %33 = arith.addf %30, %32 : vector<16x128xf32>
      %c0_21 = arith.constant 0 : index
      %c0_22 = arith.constant 0 : index
      %34 = vector.load %arg7[%c0_21, %c0_22] : memref<16x128xf32, #tpu.memory_space<vmem>>, vector<16x128xf32>
      tpu.vector_store %arg7[%c0_21, %c0_22], %33 {strides = array<i32>} : memref<16x128xf32, #tpu.memory_space<vmem>>, vector<16x128xf32>,
    } else {
    }
    return
  }
  func.func @transform_0(%arg0: i32, %arg1: i32) -> (i32, i32) {
    %c0_i32 = arith.constant 0 : i32
    %c0_i32_0 = arith.constant 0 : i32
    return %arg0, %c0_i32 : i32, i32
  }
  func.func @transform_1(%arg0: i32, %arg1: i32) -> (i32, i32, i32) {
    %c0_i32 = arith.constant 0 : i32
    %c0_i32_0 = arith.constant 0 : i32
    %c0_i32_1 = arith.constant 0 : i32
    return %arg1, %c0_i32, %c0_i32_0 : i32, i32, i32
  }
  func.func @transform_2(%arg0: i32, %arg1: i32) -> (i32, i32, i32) {
    %c0_i32 = arith.constant 0 : i32
    %c0_i32_0 = arith.constant 0 : i32
    %c0_i32_1 = arith.constant 0 : i32
    return %arg1, %c0_i32, %c0_i32_0 : i32, i32, i32
  }
  func.func @transform_3(%arg0: i32, %arg1: i32) -> (i32, i32, i32) {
    %c0_i32 = arith.constant 0 : i32
    %c0_i32_0 = arith.constant 0 : i32
    %c0_i32_1 = arith.constant 0 : i32
    return %arg1, %c0_i32, %c0_i32_0 : i32, i32, i32
  }
  func.func @transform_4(%arg0: i32, %arg1: i32) -> (i32, i32) {
    %c0_i32 = arith.constant 0 : i32
    %c0_i32_0 = arith.constant 0 : i32
    %c0_i32_1 = arith.constant 0 : i32
    return %c0_i32, %c0_i32_0 : i32, i32
  }
  func.func @transform_5(%arg0: i32, %arg1: i32) -> (i32, i32) {
    %c0_i32 = arith.constant 0 : i32
    %c0_i32_0 = arith.constant 0 : i32
    return %arg0, %c0_i32 : i32, i32
  }
}

</mosaic_0001>

<bundles_post_ra>
// kernel: tpu_custom_call.1
= control target key start
LH: loop header
LB: loop body
LE: loop exit
PB: predicated region body
PF: predicated region fallthrough
CT: control target
= control target key end

     0   :  { %10 = vsyncpa [#allocation3], 0  ;;  %s981_s0 = inlined_call_operand.hbm [shape: bf16[16,128], index: 0, kind: input, shape index: {}]   ;;  %s982_s1 = inlined_call_operand.hbm [shape: bf16[1,128,512], index: 1, kind: input, shape index: {}]   ;;  %s983_s2 = inlined_call_operand.vmem [shape: f32[1,1,512], index: 2, kind: input, shape index: {}]   ;;  %s984_s3 = inlined_call_operand.hbm [shape: bf16[1,256,128], index: 3, kind: input, shape index: {}]   ;;  %s985_s4 = inlined_call_operand.vmem [shape: f32[1,128], index: 4, kind: input, shape index: {}]   ;;  %s986_s5 = inlined_call_operand.hbm [shape: f32[16,128], index: 5, kind: output, shape index: {}]  }
   0x1   :  { %11 = vsyncpa [#allocation6], 0 }
   0x2   :  { %12 = vsyncpa [#allocation4], 0  ;;  %s886_s18 = smov [#allocation5]   ;;  %s792_s22 = scalar_lea.hbm %s982_s1, 4096 }
   0x3   :  { %s30_s19 = sshll.u32 %s886_s18, 4  ;;  %p793_p0 = scmp.ne.s32.totalorder %s982_s1, %s792_s22  ;;  %s31_s19 = int_to_ptr.vmem [resolvable:$true] %s30_s19 }
   0x4   :  { %p796_p1 = scmp.lt.u32.totalorder %s792_s22, %s982_s1 }
   0x6   :  { %p798_p2 = pnand %p796_p1, %p793_p0 }
   0x8   :  { %801 = shalt.err (!%p798_p2)
}
   0x9   :  { %s802_s27 = scalar_lea.vmem %s31_s19, 4096  ;;  %p807_p4 = scmp.lt.s32.totalorder %s31_s19, %s31_s19 }
   0xa   :  { %p803_p3 = scmp.ne.s32.totalorder %s31_s19, %s802_s27  ;;  %p808_p5 = scmp.lt.s32.totalorder %s802_s27, %s802_s27 }
   0xc   :  { %p809_p6 = por %p808_p5, %p807_p4 }
   0xe   :  { %p810_p7 = pnand %p809_p6, %p803_p3 }
  0x10   :  { %813 = shalt.err (!%p810_p7)
}
  0x11   :  { %s887_s28 = smov 256   ;;  %s888_s29 = smov 16  }
  0x12   :  { %36 = dma.hbm_to_vmem [thread:$0]  %s982_s1, 4096, %s31_s19, [#allocation6], %s887_s28, %s887_s28, %s888_s29  }
  0x13   :  { %s889_s7 = smov [#allocation2]   ;;  %s814_s11 = scalar_lea.hbm %s981_s0, 128 }
  0x14   :  { %s18_s8 = sshll.u32 %s889_s7, 4  ;;  %p815_p8 = scmp.ne.s32.totalorder %s981_s0, %s814_s11  ;;  %s19_s8 = int_to_ptr.vmem [resolvable:$true] %s18_s8 }
  0x15   :  { %p818_p9 = scmp.lt.u32.totalorder %s814_s11, %s981_s0 }
  0x17   :  { %p820_p10 = pnand %p818_p9, %p815_p8 }
  0x19   :  { %823 = shalt.err (!%p820_p10)
}
  0x1a   :  { %s824_s16 = scalar_lea.vmem %s19_s8, 128  ;;  %p829_p12 = scmp.lt.s32.totalorder %s19_s8, %s19_s8 }
  0x1b   :  { %p825_p11 = scmp.ne.s32.totalorder %s19_s8, %s824_s16  ;;  %p830_p13 = scmp.lt.s32.totalorder %s824_s16, %s824_s16 }
  0x1d   :  { %p831_p0 = por %p830_p13, %p829_p12 }
  0x1f   :  { %p832_p1 = pnand %p831_p0, %p825_p11 }
  0x21   :  { %835 = shalt.err (!%p832_p1)
}
  0x22   :  { %s890_s1 = smov 64   ;;  %s891_s17 = smov 4  }
  0x23   :  { %24 = dma.hbm_to_vmem [thread:$0]  %s981_s0, 128, %s19_s8, [#allocation3], %s890_s1, %s890_s1, %s891_s17  }
  0x24   :  { %s892_s20 = smov [#allocation7]   ;;  %s836_s24 = scalar_lea.hbm %s984_s3, 2048 }
  0x25   :  { %s44_s21 = sshll.u32 %s892_s20, 4  ;;  %p837_p2 = scmp.ne.s32.totalorder %s984_s3, %s836_s24  ;;  %s45_s21 = int_to_ptr.vmem [resolvable:$true] %s44_s21 }
  0x26   :  { %p840_p3 = scmp.lt.u32.totalorder %s836_s24, %s984_s3 }
  0x28   :  { %p842_p4 = pnand %p840_p3, %p837_p2 }
  0x2a   :  { %845 = shalt.err (!%p842_p4)
}
  0x2b   :  { %s846_s29 = scalar_lea.vmem %s45_s21, 2048  ;;  %p851_p6 = scmp.lt.s32.totalorder %s45_s21, %s45_s21 }
  0x2c   :  { %p847_p5 = scmp.ne.s32.totalorder %s45_s21, %s846_s29  ;;  %p852_p7 = scmp.lt.s32.totalorder %s846_s29, %s846_s29 }
  0x2e   :  { %p853_p8 = por %p852_p7, %p851_p6 }
  0x30   :  { %p854_p9 = pnand %p853_p8, %p847_p5 }
  0x32   :  { %857 = shalt.err (!%p854_p9)
}
  0x33   :  { %50 = dma.hbm_to_vmem [thread:$0]  %s984_s3, 2048, %s45_s21, [#allocation6], %s890_s1, %s890_s1, %s891_s17  }
  0x34   :  { %880 = dma.done.wait [#allocation3], 128  }
  0x35   :  { %881 = vsyncadd [#allocation3], 4294967168 }
  0x36   :  { %882 = dma.done.wait [#allocation6], 6144  }
  0x37   :  { %883 = vsyncadd [#allocation6], 4294961152  ;;  %v893_v0 = vmov 0   ;;  %v711_v1 = vld [vmem:[#allocation5 + $0x4] ss:$16 sps:$4 sm:$0xff]   ;;  %v741_v29 = vld [vmem:[#allocation2] sm:$0xff]   ;;  %v99_v50 = vlaneseq }
  0x38   :  { %317 = vmatprep.mubr.bf16.mxu0 %v893_v0  ;;  %360 = vmatprep.mubr.bf16.mxu1 %v893_v0  ;;  %v713_v2 = vld [vmem:[#allocation5] ss:$16 sps:$4 sm:$0xff]   ;;  %v714_v3 = vld [vmem:[#allocation5 + $0x24] ss:$16 sps:$4 sm:$0xff]   ;;  %v732_v8 = vld [vmem:[#allocation5 + $0xc] ss:$16 sps:$4 sm:$0xff]  }
  0x39   :  { %285 = vmatprep.subr.bf16.mxu0 %v711_v1  ;;  %v716_v4 = vld [vmem:[#allocation5 + $0x20] ss:$16 sps:$4 sm:$0xff]   ;;  %v717_v5 = vld [vmem:[#allocation5 + $0x44] ss:$16 sps:$4 sm:$0xff]   ;;  %v734_v9 = vld [vmem:[#allocation5 + $0x8] ss:$16 sps:$4 sm:$0xff]   ;;  %328 = vmatprep.subr.bf16.mxu1 %v732_v8 }
  0x3a   :  { %286 = vmatpush1.bf16.msra.mxu0 %v713_v2  ;;  %v719_v6 = vld [vmem:[#allocation5 + $0x40] ss:$16 sps:$4 sm:$0xff]   ;;  %v720_v7 = vld [vmem:[#allocation5 + $0x64] ss:$16 sps:$4 sm:$0xff]   ;;  %v738_v12 = vld [vmem:[#allocation5 + $0x2c] ss:$16 sps:$4 sm:$0xff]   ;;  %329 = vmatpush1.bf16.msra.mxu1 %v734_v9 }
  0x3b   :  { %287 = vmatprep.subr.bf16.mxu0 %v714_v3  ;;  %v722_v10 = vld [vmem:[#allocation5 + $0x60] ss:$16 sps:$4 sm:$0xff]   ;;  %v723_v11 = vld [vmem:[#allocation5 + $0x84] ss:$16 sps:$4 sm:$0xff]   ;;  %v740_v13 = vld [vmem:[#allocation5 + $0x28] ss:$16 sps:$4 sm:$0xff]   ;;  %330 = vmatprep.subr.bf16.mxu1 %v738_v12 }
  0x3c   :  { %v725_v14 = vld [vmem:[#allocation5 + $0x80] ss:$16 sps:$4 sm:$0xff]   ;;  %v742_v15 = vld [vmem:[#allocation5 + $0x4c] ss:$16 sps:$4 sm:$0xff]   ;;  %v726_v16 = vld [vmem:[#allocation5 + $0xa4] ss:$16 sps:$4 sm:$0xff]  }
  0x3d   :  { %v744_v17 = vld [vmem:[#allocation5 + $0x48] ss:$16 sps:$4 sm:$0xff]   ;;  %v745_v18 = vld [vmem:[#allocation5 + $0x6c] ss:$16 sps:$4 sm:$0xff]   ;;  %v728_v19 = vld [vmem:[#allocation5 + $0xa0] ss:$16 sps:$4 sm:$0xff]  }
  0x3e   :  { %288 = vmatpush1.bf16.msra.mxu0 %v716_v4  ;;  %331 = vmatpush1.bf16.msra.mxu1 %v740_v13  ;;  %v729_v20 = vld [vmem:[#allocation5 + $0xc4] ss:$16 sps:$4 sm:$0xff]   ;;  %v731_v21 = vld [vmem:[#allocation5 + $0xc0] ss:$16 sps:$4 sm:$0xff]   ;;  %v747_v22 = vld [vmem:[#allocation5 + $0x68] ss:$16 sps:$4 sm:$0xff]  }
  0x3f   :  { %289 = vmatprep.subr.bf16.mxu0 %v717_v5  ;;  %332 = vmatprep.subr.bf16.mxu1 %v742_v15  ;;  %v735_v23 = vld [vmem:[#allocation5 + $0xe4] ss:$16 sps:$4 sm:$0xff]   ;;  %v748_v24 = vld [vmem:[#allocation5 + $0x8c] ss:$16 sps:$4 sm:$0xff]   ;;  %v750_v25 = vld [vmem:[#allocation5 + $0x88] ss:$16 sps:$4 sm:$0xff]  }
  0x40   :  { %v751_v26 = vld [vmem:[#allocation5 + $0xac] ss:$16 sps:$4 sm:$0xff]   ;;  %v737_v27 = vld [vmem:[#allocation5 + $0xe0] ss:$16 sps:$4 sm:$0xff]   ;;  %v753_v28 = vld [vmem:[#allocation5 + $0xa8] ss:$16 sps:$4 sm:$0xff]  }
  0x41   :  { %v754_v30 = vld [vmem:[#allocation5 + $0xcc] ss:$16 sps:$4 sm:$0xff]   ;;  %v756_v31 = vld [vmem:[#allocation5 + $0xc8] ss:$16 sps:$4 sm:$0xff]   ;;  %v760_v34 = vld [vmem:[#allocation7 + $0x40] sm:$0xff]   ;;  %v100_v51 = vshrl.u32 %v99_v50, 7 }
  0x42   :  { %290 = vmatpush1.bf16.msra.mxu0 %v719_v6  ;;  %333 = vmatpush1.bf16.msra.mxu1 %v744_v17  ;;  %v757_v32 = vld [vmem:[#allocation5 + $0xec] ss:$16 sps:$4 sm:$0xff]   ;;  %v759_v33 = vld [vmem:[#allocation5 + $0xe8] ss:$16 sps:$4 sm:$0xff]   ;;  %v761_v35 = vld [vmem:[#allocation7] sm:$0xff]   ;;  %s894_s8 = smov [#allocation8]  }
  0x43   :  { %291 = vmatprep.subr.bf16.mxu0 %v720_v7  ;;  %334 = vmatprep.subr.bf16.mxu1 %v745_v18  ;;  %v762_v36 = vld [vmem:[#allocation7 + $0x48] sm:$0xff]   ;;  %v764_v38 = vld [vmem:[#allocation7 + $0x50] sm:$0xff]   ;;  %v766_v40 = vld [vmem:[#allocation7 + $0x58] sm:$0xff]   ;;  %v101_v52 = vsub.s32 0, %v100_v51  ;;  %v105_v54 = vsub.s32 1, %v100_v51  ;;  %v109_v17 = vsub.s32 2, %v100_v51 }
  0x44   :  { %v763_v37 = vld [vmem:[#allocation7 + $0x8] sm:$0xff]   ;;  %v765_v39 = vld [vmem:[#allocation7 + $0x10] sm:$0xff]   ;;  %v767_v41 = vld [vmem:[#allocation7 + $0x18] sm:$0xff]   ;;  %v113_v18 = vsub.s32 3, %v100_v51  ;;  %s611_s9 = sshll.u32 %s894_s8, 4  ;;  %s612_s9 = int_to_ptr.vmem [resolvable:$true] %s611_s9 }
  0x45   :  { %v768_v42 = vld [vmem:[#allocation7 + $0x60] sm:$0xff]   ;;  %v770_v44 = vld [vmem:[#allocation7 + $0x68] sm:$0xff]   ;;  %v772_v46 = vld [vmem:[#allocation7 + $0x70] sm:$0xff]   ;;  %s858_s10 = scalar_lea.vmem %s612_s9, 256  ;;  %p863_p11 = scmp.lt.s32.totalorder %s612_s9, %s612_s9 }
  0x46   :  { %292 = vmatpush1.bf16.msra.mxu0 %v722_v10  ;;  %335 = vmatpush1.bf16.msra.mxu1 %v747_v22  ;;  %v769_v43 = vld [vmem:[#allocation7 + $0x20] sm:$0xff]   ;;  %v771_v45 = vld [vmem:[#allocation7 + $0x28] sm:$0xff]   ;;  %v773_v47 = vld [vmem:[#allocation7 + $0x30] sm:$0xff]   ;;  %p859_p10 = scmp.ne.s32.totalorder %s612_s9, %s858_s10  ;;  %p864_p12 = scmp.lt.s32.totalorder %s858_s10, %s858_s10 }
  0x47   :  { %293 = vmatprep.subr.bf16.mxu0 %v723_v11  ;;  %336 = vmatprep.subr.bf16.mxu1 %v748_v24  ;;  %v774_v48 = vld [vmem:[#allocation7 + $0x78] sm:$0xff]  }
  0x48   :  { %v775_v49 = vld [vmem:[#allocation7 + $0x38] sm:$0xff]   ;;  %p865_p13 = por %p864_p12, %p863_p11 }
  0x49   :  { %v97_v53 = vld [vmem:[%s983_s2] sm:$0xf] }
  0x4a   :  { %294 = vmatpush1.bf16.msra.mxu0 %v725_v14  ;;  %337 = vmatpush1.bf16.msra.mxu1 %v750_v25  ;;  %v102_v55 = vrot.slane %v97_v53, %v101_v52  ;;  %v106_v56 = vrot.slane %v97_v53, %v105_v54  ;;  %p866_p0 = pnand %p865_p13, %p859_p10 }
  0x4b   :  { %295 = vmatprep.subr.bf16.mxu0 %v726_v16  ;;  %338 = vmatprep.subr.bf16.mxu1 %v751_v26 }
  0x4e   :  { %296 = vmatpush1.bf16.msra.mxu0 %v728_v19  ;;  %339 = vmatpush1.bf16.msra.mxu1 %v753_v28  ;;  %v110_v19 = vrot.slane %v97_v53, %v109_v17 }
  0x4f   :  { %297 = vmatprep.subr.bf16.mxu0 %v729_v20  ;;  %340 = vmatprep.subr.bf16.mxu1 %v754_v30  ;;  %v114_v20 = vrot.slane %v97_v53, %v113_v18 }
  0x52   :  { %298 = vmatpush1.bf16.msra.mxu0 %v731_v21  ;;  %341 = vmatpush1.bf16.msra.mxu1 %v756_v31 }
  0x53   :  { %299 = vmatprep.subr.bf16.mxu0 %v735_v23  ;;  %342 = vmatprep.subr.bf16.mxu1 %v757_v32 }
  0x56   :  { %300 = vmatpush1.bf16.msra.mxu0 %v737_v27  ;;  %343 = vmatpush1.bf16.msra.mxu1 %v759_v33 }
  0x57   :  { %678 = vmatprep.subr.bf16.mxu0 %v760_v34 }
  0x59   :  { %318 = vmatmul.mubr.bf16.vlgmr.msra.gmra.mrb[0].mxu0 %v741_v29  ;;  %361 = vmatmul.mubr.bf16.vlgmr.msra.gmra.mrb[0].mxu1 %v741_v29 }
  0x5a   :  { %679 = vmatpush3.bf16.msra.mxu0 %v761_v35 }
  0x5b   :  { %680 = vmatprep.subr.bf16.mxu0 %v762_v36 }
  0x5e   :  { %681 = vmatpush3.bf16.msra.mxu0 %v763_v37 }
  0x5f   :  { %682 = vmatprep.subr.bf16.mxu0 %v764_v38 }
  0x62   :  { %683 = vmatpush3.bf16.msra.mxu0 %v765_v39 }
  0x63   :  { %684 = vmatprep.subr.bf16.mxu0 %v766_v40 }
  0x66   :  { %685 = vmatpush3.bf16.msra.mxu0 %v767_v41  ;;  %v677_v41 = vld [vmem:[%s985_s4] ss:$0 sm:$0xff] }
  0x67   :  { %686 = vmatprep.subr.bf16.mxu0 %v768_v42 }
  0x6a   :  { %687 = vmatpush3.bf16.msra.mxu0 %v769_v43 }
  0x6b   :  { %688 = vmatprep.subr.bf16.mxu0 %v770_v44 }
  0x6e   :  { %689 = vmatpush3.bf16.msra.mxu0 %v771_v45 }
  0x6f   :  { %690 = vmatprep.subr.bf16.mxu0 %v772_v46 }
  0x72   :  { %691 = vmatpush3.bf16.msra.mxu0 %v773_v47 }
  0x73   :  { %692 = vmatprep.subr.bf16.mxu0 %v774_v48 }
  0x76   :  { %693 = vmatpush3.bf16.msra.mxu0 %v775_v49 }
 0x12c   :  { %v319_v57 = vpop.f32.mrb[0].mxu0  ;;  %v362_v5 = vpop.f32.mrb[0].mxu1 }
 0x12d   :  { %v320_v58 = vadd.f32 %v319_v57, %v102_v55  ;;  %v321_v59 = vpop.f32.mrb[1].mxu0  ;;  %v364_v6 = vpop.f32.mrb[1].mxu1  ;;  %v363_v21 = vadd.f32 %v362_v5, %v110_v19 }
 0x12e   :  { %v322_v60 = vadd.f32 %v321_v59, %v106_v56  ;;  %v323_v61 = vpop.f32.mrb[2].mxu0  ;;  %v366_v7 = vpop.f32.mrb[2].mxu1  ;;  %v365_v23 = vadd.f32 %v364_v6, %v114_v20 }
 0x12f   :  { %v657_v62 = vmul.f32 -1.442695, %v320_v58  ;;  %v324_v63 = vadd.f32 %v323_v61, %v102_v55  ;;  %v325_v0 = vpop.f32.mrb[3].mxu0  ;;  %v368_v8 = vpop.f32.mrb[3].mxu1  ;;  %v367_v31 = vadd.f32 %v366_v7, %v110_v19 }
 0x130   :  { %v658_v1 = vmul.f32 -1.442695, %v322_v60  ;;  %v326_v2 = vadd.f32 %v325_v0, %v106_v56  ;;  %v369_v34 = vadd.f32 %v368_v8, %v114_v20 }
 0x131   :  { %776 = vpow2.f32 %v657_v62  ;;  %v659_v3 = vmul.f32 -1.442695, %v324_v63 }
 0x132   :  { %778 = vpow2.f32 %v658_v1  ;;  %v660_v4 = vmul.f32 -1.442695, %v326_v2 }
 0x133   :  { %780 = vpow2.f32 %v659_v3 }
 0x134   :  { %782 = vpow2.f32 %v660_v4 }
 0x13b   :  { %v777_v9 = vpop.eup %776 }
 0x13c   :  { %v779_v10 = vpop.eup %778  ;;  %v383_v11 = vadd.f32 1.0, %v777_v9 }
 0x13d   :  { %v781_v12 = vpop.eup %780  ;;  %v384_v13 = vadd.f32 1.0, %v779_v10 }
 0x13e   :  { %v783_v14 = vpop.eup %782  ;;  %784 = vrcp.f32 %v383_v11  ;;  %v385_v15 = vadd.f32 1.0, %v781_v12 }
 0x13f   :  { %786 = vrcp.f32 %v384_v13  ;;  %v386_v16 = vadd.f32 1.0, %v783_v14 }
 0x140   :  { %788 = vrcp.f32 %v385_v15 }
 0x141   :  { %790 = vrcp.f32 %v386_v16 }
 0x148   :  { %v785_v22 = vpop.eup %784 }
 0x149   :  { %v787_v24 = vpop.eup %786  ;;  %v395_v25 = vmul.f32 %v785_v22, %v320_v58 }
 0x14a   :  { %v789_v26 = vpop.eup %788  ;;  %v396_v27 = vmul.f32 %v787_v24, %v322_v60 }
 0x14b   :  { %v791_v28 = vpop.eup %790  ;;  %v397_v29 = vmul.f32 %v789_v26, %v324_v63  ;;  %v399_v30 = vmul.f32 %v395_v25, %v363_v21 }
 0x14c   :  { %v398_v32 = vmul.f32 %v791_v28, %v326_v2  ;;  %v400_v33 = vmul.f32 %v396_v27, %v365_v23 }
 0x14d   :  { %v401_v35 = vmul.f32 %v397_v29, %v367_v31 }
 0x14e   :  { %v402_v36 = vmul.f32 %v398_v32, %v369_v34 }
 0x14f   :  { %v403_v37 = vpack.c.bf16 %v401_v35, %v399_v30 }
 0x150   :  { %v404_v38 = vpack.c.bf16 %v402_v36, %v400_v33 }
 0x152   :  { %565 = vmatprep.mubr.bf16.mxu0 %v404_v38 }
 0x153   :  { %566 = vmatmul.mubr.bf16.vlgmr.msra.gmra.mrb[4].mxu0 %v403_v37 }
 0x226   :  { %v694_v39 = vpop.f32.mrb[4].mxu0 }
 0x227   :  { %v695_v40 = vpop.f32.mrb[5].mxu0 }
 0x228   :  { %v696_v42 = vadd.f32 %v695_v40, %v694_v39  ;;  %v697_v43 = vpop.f32.mrb[6].mxu0 }
 0x229   :  { %v698_v44 = vpop.f32.mrb[7].mxu0 }
 0x22a   :  { %v602_v45 = vadd.f32 %v696_v42, %v677_v41  ;;  %v699_v46 = vadd.f32 %v698_v44, %v697_v43 }
 0x22c   :  { %604 = vst [vmem:[#allocation8] sm:$0xff] %v602_v45  ;;  %v603_v47 = vadd.f32 %v699_v46, %v677_v41 }
 0x22e   :  { %605 = vst [vmem:[#allocation8 + $0x8] sm:$0xff] %v603_v47 }
 0x22f   :  { %869 = shalt.err (!%p866_p0)
}
 0x230   :  { %s870_s12 = scalar_lea.hbm %s986_s5, 256 }
 0x231   :  { %p871_p1 = scmp.ne.s32.totalorder %s986_s5, %s870_s12  ;;  %p874_p2 = scmp.lt.u32.totalorder %s870_s12, %s986_s5 }
 0x233   :  { %p876_p3 = pnand %p874_p2, %p871_p1 }
 0x235   :  { %879 = shalt.err (!%p876_p3)
}
 0x236   :  { %s895_s1 = smov 128   ;;  %s896_s17 = smov 8  }
 0x237   :  { %617 = dma.vmem_to_hbm [thread:$0]  %s612_s9, 256, %s986_s5, [#allocation4], %s895_s1, %s895_s1, %s896_s17  }
 0x238   :  { %884 = dma.done.wait [#allocation4], 256  }
 0x239   :  { %885 = vsyncadd [#allocation4], 4294967040 }
 0x23a   :  { %621 = vsyncpa [#allocation3], 1 }
 0x23b   :  { %622 = vsyncpa [#allocation6], 1 }
 0x23c   :  { %623 = vsyncpa [#allocation4], 1 }

</bundles_post_ra>
